<compile_context>
chip_gen: v7x
topology: tpu7x:2x2x1
jax: 0.10.0
libtpu: 0.0.40
codegen_flags: <defaults>
</compile_context>

<pallas_src>
import functools

import jax
import jax.numpy as jnp
import numpy as np
from jax.experimental import pallas as pl
from jax.experimental.pallas import tpu as pltpu

LANE = 128                       # feature dims padded to multiples of this (lane-dense stores)
TILE_CANDIDATES = (512, 256, 128)  # propagation tile sizes (must divide n_pad)
VMEM_LIMIT = 48 * 1024 * 1024    # scoped-VMEM cap; well under v7x's 64 MiB, tiny vs actual use


def _round_up(x, m):
    return ((x + m - 1) // m) * m


def _pick_tile(n_pad):
    # Largest tile that divides n_pad while keeping >= 2 row tiles (v7x megacore needs >= 2
    # blocks on the "parallel" axis).  n_pad is always a multiple of 128.
    for t in TILE_CANDIDATES:
        if n_pad % t == 0 and n_pad // t >= 2:
            return t
    return n_pad  # n_pad == 128: single tile, nothing to split


# ---------------------------------------------------------------------------
# Pallas kernels
# ---------------------------------------------------------------------------
def xw_scale_kernel(x_ref, w_ref, d_ref, o_ref):
    # XW1s = (X @ W1) * d^-1/2  (row pre-scale for the folded normalization), bf16 inputs,
    # f32 accumulate, bf16 store (it is the propagation RHS).
    xw = jnp.dot(x_ref[...], w_ref[...], preferred_element_type=jnp.float32)
    o_ref[...] = (xw * d_ref[...]).astype(o_ref.dtype)


def prop1_kernel(a_ref, xw_ref, b_ref, w2_ref, d_ref, o_ref, acc_ref, *, tk):
    # Layer-1 propagation + fused epilogue, with folded D^-1/2 normalization:
    #   acc_i  = sum_k C[i,k] * XW1s[k]              (C = int8 (A+I) counts, f32 accumulate)
    #   h_i    = relu(d_i * acc_i + b1)              (== relu(conv1(x))_i)
    #   out_i  = d_i * (h_i @ W2)                    (pre-scaled layer-2 input, bf16 store)
    k = pl.program_id(1)

    @pl.when(k == 0)
    def _():
        acc_ref[...] = jnp.zeros_like(acc_ref)

    start = pl.multiple_of(k * tk, tk)
    # int8 -> f32 -> bf16 upcast on the VPU (ample slack in this HBM-bound regime).
    a = a_ref[...].astype(jnp.float32).astype(jnp.bfloat16)
    acc_ref[...] += jnp.dot(
        a, xw_ref[pl.ds(start, tk), :], preferred_element_type=jnp.float32
    )

    @pl.when(k == pl.num_programs(1) - 1)
    def _():
        d = d_ref[...]
        h = jnp.maximum(acc_ref[...] * d + b_ref[...], 0.0)
        # dropout(p, training=False) == identity
        out = jnp.dot(h.astype(jnp.bfloat16), w2_ref[...],
                      preferred_element_type=jnp.float32)
        o_ref[...] = (out * d).astype(o_ref.dtype)


def prop2_kernel(a_ref, xw_ref, b_ref, d_ref, o_ref, acc_ref, *, tk):
    # Layer-2 propagation:  out_i = d_i * sum_k C[i,k] * XW2s[k] + b2   (f32 output)
    k = pl.program_id(1)

    @pl.when(k == 0)
    def _():
        acc_ref[...] = jnp.zeros_like(acc_ref)

    start = pl.multiple_of(k * tk, tk)
    a = a_ref[...].astype(jnp.float32).astype(jnp.bfloat16)
    acc_ref[...] += jnp.dot(
        a, xw_ref[pl.ds(start, tk), :], preferred_element_type=jnp.float32
    )

    @pl.when(k == pl.num_programs(1) - 1)
    def _():
        o_ref[...] = (acc_ref[...] * d_ref[...] + b_ref[...]).astype(o_ref.dtype)


# ---------------------------------------------------------------------------
# pallas_call wrappers
# ---------------------------------------------------------------------------
def feature_transform(x_p, w_p, dinv_p, tm):
    n_pad, f_in = x_p.shape
    f_out = w_p.shape[1]
    return pl.pallas_call(
        xw_scale_kernel,
        out_shape=jax.ShapeDtypeStruct((n_pad, f_out), jnp.bfloat16),
        grid=(n_pad // tm,),
        in_specs=[
            pl.BlockSpec((tm, f_in), lambda i: (i, 0)),       # X row tile (bf16)
            pl.BlockSpec((f_in, f_out), lambda i: (0, 0)),    # W1 (bf16, resident)
            pl.BlockSpec((tm, 1), lambda i: (i, 0)),          # d^-1/2 row tile (f32)
        ],
        out_specs=pl.BlockSpec((tm, f_out), lambda i: (i, 0)),
        compiler_params=pltpu.CompilerParams(
            dimension_semantics=("parallel",), vmem_limit_bytes=VMEM_LIMIT
        ),
    )(x_p, w_p, dinv_p)


def propagate_layer1(a_p, xw1_p, b1_p, w2_p, dinv_p, tm, tk):
    n_pad = a_p.shape[0]
    hid = xw1_p.shape[1]
    out = w2_p.shape[1]
    return pl.pallas_call(
        functools.partial(prop1_kernel, tk=tk),
        out_shape=jax.ShapeDtypeStruct((n_pad, out), jnp.bfloat16),
        grid=(n_pad // tm, n_pad // tk),
        in_specs=[
            pl.BlockSpec((tm, tk), lambda i, k: (i, k)),       # (A+I) counts tile (int8, streamed)
            pl.BlockSpec((n_pad, hid), lambda i, k: (0, 0)),   # XW1s: VMEM-resident, never re-read
            pl.BlockSpec((1, hid), lambda i, k: (0, 0)),       # b1
            pl.BlockSpec((hid, out), lambda i, k: (0, 0)),     # W2 (bf16, epilogue only)
            pl.BlockSpec((tm, 1), lambda i, k: (i, 0)),        # d^-1/2 row tile
        ],
        out_specs=pl.BlockSpec((tm, out), lambda i, k: (i, 0)),
        scratch_shapes=[pltpu.VMEM((tm, hid), jnp.float32)],
        compiler_params=pltpu.CompilerParams(
            dimension_semantics=("parallel", "arbitrary"), vmem_limit_bytes=VMEM_LIMIT
        ),
    )(a_p, xw1_p, b1_p, w2_p, dinv_p)


def propagate_layer2(a_p, xw2_p, b2_p, dinv_p, tm, tk):
    n_pad = a_p.shape[0]
    out = xw2_p.shape[1]
    return pl.pallas_call(
        functools.partial(prop2_kernel, tk=tk),
        out_shape=jax.ShapeDtypeStruct((n_pad, out), jnp.float32),
        grid=(n_pad // tm, n_pad // tk),
        in_specs=[
            pl.BlockSpec((tm, tk), lambda i, k: (i, k)),       # (A+I) counts tile (int8, streamed)
            pl.BlockSpec((n_pad, out), lambda i, k: (0, 0)),   # XW2s: VMEM-resident
            pl.BlockSpec((1, out), lambda i, k: (0, 0)),       # b2
            pl.BlockSpec((tm, 1), lambda i, k: (i, 0)),        # d^-1/2 row tile
        ],
        out_specs=pl.BlockSpec((tm, out), lambda i, k: (i, 0)),
        scratch_shapes=[pltpu.VMEM((tm, out), jnp.float32)],
        compiler_params=pltpu.CompilerParams(
            dimension_semantics=("parallel", "arbitrary"), vmem_limit_bytes=VMEM_LIMIT
        ),
    )(a_p, xw2_p, b2_p, dinv_p)


# ---------------------------------------------------------------------------
# Plain-JAX glue: graph construction, params, full forward
# ---------------------------------------------------------------------------
def build_graph(edge_index, n, n_pad):
    """(A+I) edge counts (int8, exact) at padded size + d^-1/2 per row (f32).

    Matches PyG gcn_norm with add_remaining_self_loops: duplicate edges accumulate weight,
    self loops are added only where missing.
    TODO(synk): int8 counts overflow for >127 duplicate edges between one node pair.
    """
    src, dst = edge_index[0], edge_index[1]
    a = jnp.zeros((n_pad, n_pad), jnp.int8).at[dst, src].add(1)  # messages flow src -> dst
    node = jnp.arange(n)
    diag = jnp.diagonal(a)[:n]
    a = a.at[node, node].add(jnp.where(diag == 0, 1, 0).astype(jnp.int8))
    deg = jnp.sum(a, axis=1, dtype=jnp.int32).astype(jnp.float32)
    d_inv_sqrt = jnp.where(deg > 0.0, jax.lax.rsqrt(deg), 0.0)
    return a, d_inv_sqrt.reshape(n_pad, 1)


def glorot_uniform(key, fan_in, fan_out):
    limit = jnp.sqrt(6.0 / (fan_in + fan_out))
    return jax.random.uniform(key, (fan_in, fan_out), jnp.float32, -limit, limit)


def init_params(key, in_channels, hidden_channels, out_channels):
    k1, k2 = jax.random.split(key)
    return {
        "w1": glorot_uniform(k1, in_channels, hidden_channels),
        "b1": jnp.zeros((1, hidden_channels), jnp.float32),
        "w2": glorot_uniform(k2, hidden_channels, out_channels),
        "b2": jnp.zeros((1, out_channels), jnp.float32),
    }


@jax.jit
def gcn_default_forward(x, edge_index, params):
    # Note: GCNConv(cached=True) would precompute the normalization once; for repeated inference
    # on a static graph, hoist build_graph (and the padding) out of this jit and reuse a_i8/dinv.
    n = x.shape[0]
    in_c, hid_c = params["w1"].shape
    out_c = params["w2"].shape[1]

    n_pad = _round_up(max(n, 1), LANE)     # pad N only to 128, decoupled from tile size
    tm = tk = _pick_tile(n_pad)

    fin_pad = _round_up(in_c, LANE)
    hid_pad = _round_up(hid_c, LANE)
    out_pad = _round_up(out_c, LANE)

    a_i8, dinv = build_graph(edge_index, n, n_pad)

    x_p = jnp.zeros((n_pad, fin_pad), jnp.bfloat16).at[:n, :in_c].set(x.astype(jnp.bfloat16))
    w1_p = jnp.zeros((fin_pad, hid_pad), jnp.bfloat16).at[:in_c, :hid_c].set(
        params["w1"].astype(jnp.bfloat16))
    b1_p = jnp.zeros((1, hid_pad), jnp.float32).at[:, :hid_c].set(params["b1"])
    w2_p = jnp.zeros((hid_pad, out_pad), jnp.bfloat16).at[:hid_c, :out_c].set(
        params["w2"].astype(jnp.bfloat16))
    b2_p = jnp.zeros((1, out_pad), jnp.float32).at[:, :out_c].set(params["b2"])

    # Layer 1: XW1 * d^-1/2 (hoisted), tiled (A+I) @ XW1s with fused d-scale + relu + (.)@W2*d.
    xw1 = feature_transform(x_p, w1_p, dinv, tm)                   # bf16 (n_pad, hid_pad)
    xw2 = propagate_layer1(a_i8, xw1, b1_p, w2_p, dinv, tm, tk)    # bf16 (n_pad, out_pad)
    # Layer 2: tiled (A+I) @ XW2s with d-scale + b2.
    out = propagate_layer2(a_i8, xw2, b2_p, dinv, tm, tk)          # f32 (n_pad, out_pad)
    return out[:n, :out_c]


def reference_forward(x, edge_index, params):
    n = x.shape[0]
    src, dst = edge_index[0], edge_index[1]
    adj = jnp.zeros((n, n), jnp.float32).at[dst, src].add(1.0)
    diag = jnp.diagonal(adj)
    adj = adj + jnp.diag(jnp.where(diag == 0.0, 1.0, 0.0))
    deg = adj.sum(axis=1)
    dis = jnp.where(deg > 0, 1.0 / jnp.sqrt(deg), 0.0)
    a_hat = dis[:, None] * adj * dis[None, :]
    h = a_hat @ (x @ params["w1"]) + params["b1"]
    h = jnp.maximum(h, 0.0)
    return a_hat @ (h @ params["w2"]) + params["b2"]


# ---------------------------------------------------------------------------
if __name__ == "__main__":
    N_NODES = 16
    IN_C, HID_C, OUT_C = 8, 32, 4
    DROPOUT = 0.5  # identity in eval mode

    key = jax.random.PRNGKey(0)
    k_x, k_e, k_p = jax.random.split(key, 3)

    x = jax.random.normal(k_x, (N_NODES, IN_C), jnp.float32)
    edge_index = jax.random.randint(k_e, (2, 40), 0, N_NODES, dtype=jnp.int32)
    params = init_params(k_p, IN_C, HID_C, OUT_C)

    out = gcn_default_forward(x, edge_index, params)
    jax.block_until_ready(out)
    assert out.shape == (N_NODES, OUT_C)

    ref = reference_forward(x, edge_index, params)
    np.testing.assert_allclose(np.asarray(out), np.asarray(ref), rtol=5e-2, atol=5e-2)

    print("KERNEL_OK")
</pallas_src>

<mosaic_0001>
module attributes {stable_mosaic.version = 11 : i64} {
  func.func @xw_scale_kernel(%arg0: i32, %arg1: memref<128x128xbf16, #tpu.memory_space<vmem>>, %arg2: memref<128x128xbf16, #tpu.memory_space<vmem>>, %arg3: memref<128x1xf32, #tpu.memory_space<vmem>>, %arg4: memref<128x128xbf16, #tpu.memory_space<vmem>>) attributes {dimension_semantics = [#tpu.dimension_semantics<parallel>], iteration_bounds = array<i64: 1>, scalar_prefetch = 0 : i64, scratch_operands = 0 : i64, tpu.core_type = #tpu.core_type<tc>, window_params = [{transform_indices = @transform_0, window_bounds = array<i64: 128, 128>}, {pipeline_mode = #tpu.pipeline_mode<synchronous>, transform_indices = @transform_1, window_bounds = array<i64: 128, 128>}, {transform_indices = @transform_2, window_bounds = array<i64: 128, 1>}, {transform_indices = @transform_3, window_bounds = array<i64: 128, 128>}]} {
    %c0 = arith.constant 0 : index
    %c0_0 = arith.constant 0 : index
    %0 = vector.load %arg1[%c0, %c0_0] : memref<128x128xbf16, #tpu.memory_space<vmem>>, vector<128x128xbf16>
    %c0_1 = arith.constant 0 : index
    %c0_2 = arith.constant 0 : index
    %1 = vector.load %arg2[%c0_1, %c0_2] : memref<128x128xbf16, #tpu.memory_space<vmem>>, vector<128x128xbf16>
    %cst = arith.constant dense<0.000000e+00> : vector<128x128xf32>
    %2 = tpu.matmul %0, %1, %cst {dimension_numbers = #tpu.dot_dimension_numbers<[1], [0], [0], [1], [0, 0, 1, 1], [], []>} : vector<128x128xbf16>, vector<128x128xbf16>, vector<128x128xf32> -> vector<128x128xf32>
    %c0_3 = arith.constant 0 : index
    %c0_4 = arith.constant 0 : index
    %3 = vector.load %arg3[%c0_3, %c0_4] : memref<128x1xf32, #tpu.memory_space<vmem>>, vector<128x1xf32>
    %4 = vector.broadcast %3 : vector<128x1xf32> to vector<128x128xf32>
    %5 = arith.mulf %2, %4 : vector<128x128xf32>
    %6 = arith.truncf %5 : vector<128x128xf32> to vector<128x128xbf16>
    %c0_5 = arith.constant 0 : index
    %c0_6 = arith.constant 0 : index
    %7 = vector.load %arg4[%c0_5, %c0_6] : memref<128x128xbf16, #tpu.memory_space<vmem>>, vector<128x128xbf16>
    tpu.vector_store %arg4[%c0_5, %c0_6], %6 {strides = array<i32>} : memref<128x128xbf16, #tpu.memory_space<vmem>>, vector<128x128xbf16>,
    return
  }
  func.func @transform_0(%arg0: i32) -> (i32, i32) {
    %c0_i32 = arith.constant 0 : i32
    %c0_i32_0 = arith.constant 0 : i32
    return %arg0, %c0_i32 : i32, i32
  }
  func.func @transform_1(%arg0: i32) -> (i32, i32) {
    %c0_i32 = arith.constant 0 : i32
    %c0_i32_0 = arith.constant 0 : i32
    %c0_i32_1 = arith.constant 0 : i32
    return %c0_i32, %c0_i32_0 : i32, i32
  }
  func.func @transform_2(%arg0: i32) -> (i32, i32) {
    %c0_i32 = arith.constant 0 : i32
    %c0_i32_0 = arith.constant 0 : i32
    return %arg0, %c0_i32 : i32, i32
  }
  func.func @transform_3(%arg0: i32) -> (i32, i32) {
    %c0_i32 = arith.constant 0 : i32
    %c0_i32_0 = arith.constant 0 : i32
    return %arg0, %c0_i32 : i32, i32
  }
}

module attributes {stable_mosaic.version = 11 : i64} {
  func.func @prop1_kernel(%arg0: i32, %arg1: i32, %arg2: memref<128x128xi8, #tpu.memory_space<vmem>>, %arg3: memref<128x128xbf16, #tpu.memory_space<vmem>>, %arg4: memref<1x128xf32, #tpu.memory_space<vmem>>, %arg5: memref<128x128xbf16, #tpu.memory_space<vmem>>, %arg6: memref<128x1xf32, #tpu.memory_space<vmem>>, %arg7: memref<128x128xbf16, #tpu.memory_space<vmem>>, %arg8: memref<128x128xf32, #tpu.memory_space<vmem>>) attributes {dimension_semantics = [#tpu.dimension_semantics<parallel>, #tpu.dimension_semantics<arbitrary>], iteration_bounds = array<i64: 1, 1>, scalar_prefetch = 0 : i64, scratch_operands = 1 : i64, tpu.core_type = #tpu.core_type<tc>, window_params = [{transform_indices = @transform_0, window_bounds = array<i64: 128, 128>}, {pipeline_mode = #tpu.pipeline_mode<synchronous>, transform_indices = @transform_1, window_bounds = array<i64: 128, 128>}, {pipeline_mode = #tpu.pipeline_mode<synchronous>, transform_indices = @transform_2, window_bounds = array<i64: 1, 128>}, {pipeline_mode = #tpu.pipeline_mode<synchronous>, transform_indices = @transform_3, window_bounds = array<i64: 128, 128>}, {transform_indices = @transform_4, window_bounds = array<i64: 128, 1>}, {transform_indices = @transform_5, window_bounds = array<i64: 128, 128>}]} {
    %c0_i32 = arith.constant 0 : i32
    %0 = arith.cmpi eq, %arg1, %c0_i32 : i32
    %1 = arith.extui %0 : i1 to i32
    %c0_i32_0 = arith.constant 0 : i32
    %2 = arith.cmpi ne, %1, %c0_i32_0 : i32
    scf.if %2 {
      %cst_9 = arith.constant 0.000000e+00 : f32
      %17 = vector.broadcast %cst_9 : f32 to vector<128x128xf32>
      %c0_10 = arith.constant 0 : index
      %c0_11 = arith.constant 0 : index
      %18 = vector.load %arg8[%c0_10, %c0_11] : memref<128x128xf32, #tpu.memory_space<vmem>>, vector<128x128xf32>
      tpu.vector_store %arg8[%c0_10, %c0_11], %17 {strides = array<i32>} : memref<128x128xf32, #tpu.memory_space<vmem>>, vector<128x128xf32>,
    } else {
    }
    %c128_i32 = arith.constant 128 : i32
    %3 = arith.muli %arg1, %c128_i32 : i32
    %4 = tpu.assume_multiple %3, 128 : i32
    %c0 = arith.constant 0 : index
    %c0_1 = arith.constant 0 : index
    %5 = vector.load %arg2[%c0, %c0_1] : memref<128x128xi8, #tpu.memory_space<vmem>>, vector<128x128xi8>
    %6 = arith.sitofp %5 : vector<128x128xi8> to vector<128x128xf32>
    %7 = arith.truncf %6 : vector<128x128xf32> to vector<128x128xbf16>
    %c0_2 = arith.constant 0 : index
    %c0_3 = arith.constant 0 : index
    %8 = vector.load %arg8[%c0_2, %c0_3] : memref<128x128xf32, #tpu.memory_space<vmem>>, vector<128x128xf32>
    %9 = arith.index_cast %4 : i32 to index
    %c0_4 = arith.constant 0 : index
    %10 = vector.load %arg3[%9, %c0_4] : memref<128x128xbf16, #tpu.memory_space<vmem>>, vector<128x128xbf16>
    %cst = arith.constant dense<0.000000e+00> : vector<128x128xf32>
    %11 = tpu.matmul %7, %10, %cst {dimension_numbers = #tpu.dot_dimension_numbers<[1], [0], [0], [1], [0, 0, 1, 1], [], []>} : vector<128x128xbf16>, vector<128x128xbf16>, vector<128x128xf32> -> vector<128x128xf32>
    %12 = arith.addf %8, %11 : vector<128x128xf32>
    %c0_5 = arith.constant 0 : index
    %c0_6 = arith.constant 0 : index
    %13 = vector.load %arg8[%c0_5, %c0_6] : memref<128x128xf32, #tpu.memory_space<vmem>>, vector<128x128xf32>
    tpu.vector_store %arg8[%c0_5, %c0_6], %12 {strides = array<i32>} : memref<128x128xf32, #tpu.memory_space<vmem>>, vector<128x128xf32>,
    %c0_i32_7 = arith.constant 0 : i32
    %14 = arith.cmpi eq, %arg1, %c0_i32_7 : i32
    %15 = arith.extui %14 : i1 to i32
    %c0_i32_8 = arith.constant 0 : i32
    %16 = arith.cmpi ne, %15, %c0_i32_8 : i32
    scf.if %16 {
      %c0_9 = arith.constant 0 : index
      %c0_10 = arith.constant 0 : index
      %17 = vector.load %arg6[%c0_9, %c0_10] : memref<128x1xf32, #tpu.memory_space<vmem>>, vector<128x1xf32>
      %c0_11 = arith.constant 0 : index
      %c0_12 = arith.constant 0 : index
      %18 = vector.load %arg8[%c0_11, %c0_12] : memref<128x128xf32, #tpu.memory_space<vmem>>, vector<128x128xf32>
      %19 = vector.broadcast %17 : vector<128x1xf32> to vector<128x128xf32>
      %20 = arith.mulf %18, %19 : vector<128x128xf32>
      %c0_13 = arith.constant 0 : index
      %c0_14 = arith.constant 0 : index
      %21 = vector.load %arg4[%c0_13, %c0_14] : memref<1x128xf32, #tpu.memory_space<vmem>>, vector<1x128xf32>
      %22 = vector.broadcast %21 : vector<1x128xf32> to vector<128x128xf32>
      %23 = arith.addf %20, %22 : vector<128x128xf32>
      %cst_15 = arith.constant 0.000000e+00 : f32
      %24 = vector.broadcast %cst_15 : f32 to vector<128x128xf32>
      %25 = arith.maximumf %23, %24 : vector<128x128xf32>
      %26 = arith.truncf %25 : vector<128x128xf32> to vector<128x128xbf16>
      %c0_16 = arith.constant 0 : index
      %c0_17 = arith.constant 0 : index
      %27 = vector.load %arg5[%c0_16, %c0_17] : memref<128x128xbf16, #tpu.memory_space<vmem>>, vector<128x128xbf16>
      %cst_18 = arith.constant dense<0.000000e+00> : vector<128x128xf32>
      %28 = tpu.matmul %26, %27, %cst_18 {dimension_numbers = #tpu.dot_dimension_numbers<[1], [0], [0], [1], [0, 0, 1, 1], [], []>} : vector<128x128xbf16>, vector<128x128xbf16>, vector<128x128xf32> -> vector<128x128xf32>
      %29 = vector.broadcast %17 : vector<128x1xf32> to vector<128x128xf32>
      %30 = arith.mulf %28, %29 : vector<128x128xf32>
      %31 = arith.truncf %30 : vector<128x128xf32> to vector<128x128xbf16>
      %c0_19 = arith.constant 0 : index
      %c0_20 = arith.constant 0 : index
      %32 = vector.load %arg7[%c0_19, %c0_20] : memref<128x128xbf16, #tpu.memory_space<vmem>>, vector<128x128xbf16>
      tpu.vector_store %arg7[%c0_19, %c0_20], %31 {strides = array<i32>} : memref<128x128xbf16, #tpu.memory_space<vmem>>, vector<128x128xbf16>,
    } else {
    }
    return
  }
  func.func @transform_0(%arg0: i32, %arg1: i32) -> (i32, i32) {
    %c0_i32 = arith.constant 0 : i32
    return %arg0, %arg1 : i32, i32
  }
  func.func @transform_1(%arg0: i32, %arg1: i32) -> (i32, i32) {
    %c0_i32 = arith.constant 0 : i32
    %c0_i32_0 = arith.constant 0 : i32
    %c0_i32_1 = arith.constant 0 : i32
    return %c0_i32, %c0_i32_0 : i32, i32
  }
  func.func @transform_2(%arg0: i32, %arg1: i32) -> (i32, i32) {
    %c0_i32 = arith.constant 0 : i32
    %c0_i32_0 = arith.constant 0 : i32
    %c0_i32_1 = arith.constant 0 : i32
    return %c0_i32, %c0_i32_0 : i32, i32
  }
  func.func @transform_3(%arg0: i32, %arg1: i32) -> (i32, i32) {
    %c0_i32 = arith.constant 0 : i32
    %c0_i32_0 = arith.constant 0 : i32
    %c0_i32_1 = arith.constant 0 : i32
    return %c0_i32, %c0_i32_0 : i32, i32
  }
  func.func @transform_4(%arg0: i32, %arg1: i32) -> (i32, i32) {
    %c0_i32 = arith.constant 0 : i32
    %c0_i32_0 = arith.constant 0 : i32
    return %arg0, %c0_i32 : i32, i32
  }
  func.func @transform_5(%arg0: i32, %arg1: i32) -> (i32, i32) {
    %c0_i32 = arith.constant 0 : i32
    %c0_i32_0 = arith.constant 0 : i32
    return %arg0, %c0_i32 : i32, i32
  }
}

module attributes {stable_mosaic.version = 11 : i64} {
  func.func @prop2_kernel(%arg0: i32, %arg1: i32, %arg2: memref<128x128xi8, #tpu.memory_space<vmem>>, %arg3: memref<128x128xbf16, #tpu.memory_space<vmem>>, %arg4: memref<1x128xf32, #tpu.memory_space<vmem>>, %arg5: memref<128x1xf32, #tpu.memory_space<vmem>>, %arg6: memref<128x128xf32, #tpu.memory_space<vmem>>, %arg7: memref<128x128xf32, #tpu.memory_space<vmem>>) attributes {dimension_semantics = [#tpu.dimension_semantics<parallel>, #tpu.dimension_semantics<arbitrary>], iteration_bounds = array<i64: 1, 1>, scalar_prefetch = 0 : i64, scratch_operands = 1 : i64, tpu.core_type = #tpu.core_type<tc>, window_params = [{transform_indices = @transform_0, window_bounds = array<i64: 128, 128>}, {pipeline_mode = #tpu.pipeline_mode<synchronous>, transform_indices = @transform_1, window_bounds = array<i64: 128, 128>}, {pipeline_mode = #tpu.pipeline_mode<synchronous>, transform_indices = @transform_2, window_bounds = array<i64: 1, 128>}, {transform_indices = @transform_3, window_bounds = array<i64: 128, 1>}, {transform_indices = @transform_4, window_bounds = array<i64: 128, 128>}]} {
    %c0_i32 = arith.constant 0 : i32
    %0 = arith.cmpi eq, %arg1, %c0_i32 : i32
    %1 = arith.extui %0 : i1 to i32
    %c0_i32_0 = arith.constant 0 : i32
    %2 = arith.cmpi ne, %1, %c0_i32_0 : i32
    scf.if %2 {
      %cst_9 = arith.constant 0.000000e+00 : f32
      %17 = vector.broadcast %cst_9 : f32 to vector<128x128xf32>
      %c0_10 = arith.constant 0 : index
      %c0_11 = arith.constant 0 : index
      %18 = vector.load %arg7[%c0_10, %c0_11] : memref<128x128xf32, #tpu.memory_space<vmem>>, vector<128x128xf32>
      tpu.vector_store %arg7[%c0_10, %c0_11], %17 {strides = array<i32>} : memref<128x128xf32, #tpu.memory_space<vmem>>, vector<128x128xf32>,
    } else {
    }
    %c128_i32 = arith.constant 128 : i32
    %3 = arith.muli %arg1, %c128_i32 : i32
    %4 = tpu.assume_multiple %3, 128 : i32
    %c0 = arith.constant 0 : index
    %c0_1 = arith.constant 0 : index
    %5 = vector.load %arg2[%c0, %c0_1] : memref<128x128xi8, #tpu.memory_space<vmem>>, vector<128x128xi8>
    %6 = arith.sitofp %5 : vector<128x128xi8> to vector<128x128xf32>
    %7 = arith.truncf %6 : vector<128x128xf32> to vector<128x128xbf16>
    %c0_2 = arith.constant 0 : index
    %c0_3 = arith.constant 0 : index
    %8 = vector.load %arg7[%c0_2, %c0_3] : memref<128x128xf32, #tpu.memory_space<vmem>>, vector<128x128xf32>
    %9 = arith.index_cast %4 : i32 to index
    %c0_4 = arith.constant 0 : index
    %10 = vector.load %arg3[%9, %c0_4] : memref<128x128xbf16, #tpu.memory_space<vmem>>, vector<128x128xbf16>
    %cst = arith.constant dense<0.000000e+00> : vector<128x128xf32>
    %11 = tpu.matmul %7, %10, %cst {dimension_numbers = #tpu.dot_dimension_numbers<[1], [0], [0], [1], [0, 0, 1, 1], [], []>} : vector<128x128xbf16>, vector<128x128xbf16>, vector<128x128xf32> -> vector<128x128xf32>
    %12 = arith.addf %8, %11 : vector<128x128xf32>
    %c0_5 = arith.constant 0 : index
    %c0_6 = arith.constant 0 : index
    %13 = vector.load %arg7[%c0_5, %c0_6] : memref<128x128xf32, #tpu.memory_space<vmem>>, vector<128x128xf32>
    tpu.vector_store %arg7[%c0_5, %c0_6], %12 {strides = array<i32>} : memref<128x128xf32, #tpu.memory_space<vmem>>, vector<128x128xf32>,
    %c0_i32_7 = arith.constant 0 : i32
    %14 = arith.cmpi eq, %arg1, %c0_i32_7 : i32
    %15 = arith.extui %14 : i1 to i32
    %c0_i32_8 = arith.constant 0 : i32
    %16 = arith.cmpi ne, %15, %c0_i32_8 : i32
    scf.if %16 {
      %c0_9 = arith.constant 0 : index
      %c0_10 = arith.constant 0 : index
      %17 = vector.load %arg7[%c0_9, %c0_10] : memref<128x128xf32, #tpu.memory_space<vmem>>, vector<128x128xf32>
      %c0_11 = arith.constant 0 : index
      %c0_12 = arith.constant 0 : index
      %18 = vector.load %arg5[%c0_11, %c0_12] : memref<128x1xf32, #tpu.memory_space<vmem>>, vector<128x1xf32>
      %19 = vector.broadcast %18 : vector<128x1xf32> to vector<128x128xf32>
      %20 = arith.mulf %17, %19 : vector<128x128xf32>
      %c0_13 = arith.constant 0 : index
      %c0_14 = arith.constant 0 : index
      %21 = vector.load %arg4[%c0_13, %c0_14] : memref<1x128xf32, #tpu.memory_space<vmem>>, vector<1x128xf32>
      %22 = vector.broadcast %21 : vector<1x128xf32> to vector<128x128xf32>
      %23 = arith.addf %20, %22 : vector<128x128xf32>
      %c0_15 = arith.constant 0 : index
      %c0_16 = arith.constant 0 : index
      %24 = vector.load %arg6[%c0_15, %c0_16] : memref<128x128xf32, #tpu.memory_space<vmem>>, vector<128x128xf32>
      tpu.vector_store %arg6[%c0_15, %c0_16], %23 {strides = array<i32>} : memref<128x128xf32, #tpu.memory_space<vmem>>, vector<128x128xf32>,
    } else {
    }
    return
  }
  func.func @transform_0(%arg0: i32, %arg1: i32) -> (i32, i32) {
    %c0_i32 = arith.constant 0 : i32
    return %arg0, %arg1 : i32, i32
  }
  func.func @transform_1(%arg0: i32, %arg1: i32) -> (i32, i32) {
    %c0_i32 = arith.constant 0 : i32
    %c0_i32_0 = arith.constant 0 : i32
    %c0_i32_1 = arith.constant 0 : i32
    return %c0_i32, %c0_i32_0 : i32, i32
  }
  func.func @transform_2(%arg0: i32, %arg1: i32) -> (i32, i32) {
    %c0_i32 = arith.constant 0 : i32
    %c0_i32_0 = arith.constant 0 : i32
    %c0_i32_1 = arith.constant 0 : i32
    return %c0_i32, %c0_i32_0 : i32, i32
  }
  func.func @transform_3(%arg0: i32, %arg1: i32) -> (i32, i32) {
    %c0_i32 = arith.constant 0 : i32
    %c0_i32_0 = arith.constant 0 : i32
    return %arg0, %c0_i32 : i32, i32
  }
  func.func @transform_4(%arg0: i32, %arg1: i32) -> (i32, i32) {
    %c0_i32 = arith.constant 0 : i32
    %c0_i32_0 = arith.constant 0 : i32
    return %arg0, %c0_i32 : i32, i32
  }
}

</mosaic_0001>

<bundles_post_ra>
// kernel: gcn_default_forward.3
= control target key start
LH: loop header
LB: loop body
LE: loop exit
PB: predicated region body
PF: predicated region fallthrough
CT: control target
= control target key end

     0   :  { %v614_v1 = vmov 0   ;;  %s755_s1 = inlined_call_operand.vmem [shape: bf16[128,128], index: 1, kind: input, shape index: {}]   ;;  %s756_s0 = inlined_call_operand.vmem [shape: bf16[128,128], index: 0, kind: input, shape index: {}]   ;;  %s757_s2 = inlined_call_operand.vmem [shape: f32[128,1], index: 2, kind: input, shape index: {}]   ;;  %s758_s3 = inlined_call_operand.vmem [shape: bf16[128,128], index: 3, kind: output, shape index: {}]  }
   0x1   :  { %v598_v0 = vld [vmem:[%s755_s1] sm:$0xff]   ;;  %597 = vset.pattern.permute.xlu1 %v614_v1  ;;  %596 = vset.pattern.permute.xlu0 %v614_v1  ;;  %v599_v2 = vld [vmem:[%s755_s1 + $0x8] sm:$0xff]   ;;  %v600_v3 = vld [vmem:[%s755_s1 + $0x10] sm:$0xff]  }
   0x2   :  { %547 = vmatprep.subr.bf16.mxu0 %v598_v0  ;;  %579 = vmatprep.subr.bf16.mxu1 %v598_v0  ;;  %v601_v4 = vld [vmem:[%s755_s1 + $0x18] sm:$0xff]   ;;  %v606_v5 = vld [vmem:[%s756_s0] sm:$0xff]   ;;  %v603_v8 = vld [vmem:[%s755_s1 + $0x28] sm:$0xff]  }
   0x3   :  { %548 = vmatpush3.bf16.msra.mxu0 %v598_v0  ;;  %587 = vmatpush3.bf16.msra.mxu1 %v598_v0  ;;  %v607_v6 = vld [vmem:[%s756_s0 + $0x20] sm:$0xff]   ;;  %v242_v9 = vld [vmem:[%s757_s2 + $0x10] sm:$0xff]  ;;  %v243_v11 = vld [vmem:[%s757_s2 + $0x18] sm:$0xff] }
   0x4   :  { %549 = vmatprep.subr.bf16.mxu0 %v599_v2  ;;  %580 = vmatprep.subr.bf16.mxu1 %v599_v2  ;;  %v602_v7 = vld [vmem:[%s755_s1 + $0x20] sm:$0xff]   ;;  %v241_v12 = vld [vmem:[%s757_s2 + $0x8] sm:$0xff]  ;;  %v604_v13 = vld [vmem:[%s755_s1 + $0x30] sm:$0xff]  }
   0x5   :  { %563 = vmatprep.mubr.bf16.mxu0 %v606_v5  ;;  %571 = vmatprep.mubr.bf16.mxu1 %v607_v6  ;;  %v240_v10 = vld [vmem:[%s757_s2] sm:$0xff]  ;;  %v245_v14 = vld [vmem:[%s757_s2 + $0x28] sm:$0xff]  ;;  %v605_v16 = vld [vmem:[%s755_s1 + $0x38] sm:$0xff]  }
   0x6   :  { %268 = vperm.xlu1 %597, %v242_v9   ;;  %258 = vperm.xlu0 %596, %v240_v10   ;;  %v244_v15 = vld [vmem:[%s757_s2 + $0x20] sm:$0xff]  ;;  %v247_v17 = vld [vmem:[%s757_s2 + $0x38] sm:$0xff]  ;;  %v246_v18 = vld [vmem:[%s757_s2 + $0x30] sm:$0xff] }
   0x7   :  { %550 = vmatpush3.bf16.msra.mxu0 %v599_v2  ;;  %588 = vmatpush3.bf16.msra.mxu1 %v599_v2  ;;  %v608_v19 = vld [vmem:[%s756_s0 + $0x8] sm:$0xff]   ;;  %v248_v22 = vld [vmem:[%s757_s2 + $0x40] sm:$0xff]  ;;  %v610_v23 = vld [vmem:[%s756_s0 + $0x10] sm:$0xff]  }
   0x8   :  { %551 = vmatprep.subr.bf16.mxu0 %v600_v3  ;;  %581 = vmatprep.subr.bf16.mxu1 %v600_v3  ;;  %v609_v20 = vld [vmem:[%s756_s0 + $0x28] sm:$0xff]   ;;  %v611_v24 = vld [vmem:[%s756_s0 + $0x30] sm:$0xff]   ;;  %v251_v25 = vld [vmem:[%s757_s2 + $0x58] sm:$0xff] }
   0x9   :  { %v249_v21 = vld [vmem:[%s757_s2 + $0x48] sm:$0xff]  ;;  %v250_v26 = vld [vmem:[%s757_s2 + $0x50] sm:$0xff]  ;;  %v612_v27 = vld [vmem:[%s756_s0 + $0x18] sm:$0xff]  }
   0xa   :  { %273 = vperm.xlu1 %597, %v243_v11   ;;  %263 = vperm.xlu0 %596, %v241_v12   ;;  %v613_v28 = vld [vmem:[%s756_s0 + $0x38] sm:$0xff]   ;;  %v253_v29 = vld [vmem:[%s757_s2 + $0x68] sm:$0xff]  ;;  %v252_v30 = vld [vmem:[%s757_s2 + $0x60] sm:$0xff] }
   0xb   :  { %552 = vmatpush3.bf16.msra.mxu0 %v600_v3  ;;  %589 = vmatpush3.bf16.msra.mxu1 %v600_v3  ;;  %v255_v31 = vld [vmem:[%s757_s2 + $0x78] sm:$0xff]  ;;  %v254_v32 = vld [vmem:[%s757_s2 + $0x70] sm:$0xff] }
   0xc   :  { %553 = vmatprep.subr.bf16.mxu0 %v601_v4  ;;  %582 = vmatprep.subr.bf16.mxu1 %v601_v4 }
   0xe   :  { %283 = vperm.xlu1 %597, %v245_v14   ;;  %278 = vperm.xlu0 %596, %v244_v15  }
   0xf   :  { %554 = vmatpush3.bf16.msra.mxu0 %v601_v4  ;;  %590 = vmatpush3.bf16.msra.mxu1 %v601_v4 }
  0x10   :  { %555 = vmatprep.subr.bf16.mxu0 %v602_v7  ;;  %583 = vmatprep.subr.bf16.mxu1 %v602_v7 }
  0x12   :  { %293 = vperm.xlu1 %597, %v247_v17   ;;  %288 = vperm.xlu0 %596, %v246_v18  }
  0x13   :  { %556 = vmatpush3.bf16.msra.mxu0 %v602_v7  ;;  %591 = vmatpush3.bf16.msra.mxu1 %v602_v7 }
  0x14   :  { %557 = vmatprep.subr.bf16.mxu0 %v603_v8  ;;  %584 = vmatprep.subr.bf16.mxu1 %v603_v8 }
  0x16   :  { %303 = vperm.xlu1 %597, %v249_v21   ;;  %298 = vperm.xlu0 %596, %v248_v22  }
  0x17   :  { %558 = vmatpush3.bf16.msra.mxu0 %v603_v8  ;;  %592 = vmatpush3.bf16.msra.mxu1 %v603_v8 }
  0x18   :  { %559 = vmatprep.subr.bf16.mxu0 %v604_v13  ;;  %585 = vmatprep.subr.bf16.mxu1 %v604_v13 }
  0x1a   :  { %313 = vperm.xlu1 %597, %v251_v25   ;;  %308 = vperm.xlu0 %596, %v250_v26  }
  0x1b   :  { %560 = vmatpush3.bf16.msra.mxu0 %v604_v13  ;;  %593 = vmatpush3.bf16.msra.mxu1 %v604_v13 }
  0x1c   :  { %561 = vmatprep.subr.bf16.mxu0 %v605_v16  ;;  %586 = vmatprep.subr.bf16.mxu1 %v605_v16 }
  0x1e   :  { %323 = vperm.xlu1 %597, %v253_v29   ;;  %318 = vperm.xlu0 %596, %v252_v30  }
  0x1f   :  { %562 = vmatpush3.bf16.msra.mxu0 %v605_v16  ;;  %594 = vmatpush3.bf16.msra.mxu1 %v605_v16 }
  0x22   :  { %564 = vmatmul.mubr.bf16.vlgmr.msra.gmra.mrb[0].mxu0 %v608_v19  ;;  %572 = vmatmul.mubr.bf16.vlgmr.msra.gmra.mrb[0].mxu1 %v609_v20 }
  0x23   :  { %567 = vmatprep.mubr.bf16.mxu0 %v610_v23  ;;  %575 = vmatprep.mubr.bf16.mxu1 %v611_v24 }
  0x24   :  { %333 = vperm.xlu1 %597, %v255_v31   ;;  %328 = vperm.xlu0 %596, %v254_v32  }
  0x2a   :  { %568 = vmatmul.mubr.bf16.gmra.mrb[4].mxu0 %v612_v27  ;;  %576 = vmatmul.mubr.bf16.gmra.mrb[4].mxu1 %v613_v28 }
  0x85   :  { %v269_v33 = vpop.permute.xlu1 %268  ;;  %v259_v34 = vpop.permute.xlu0 %258 }
  0x89   :  { %v274_v35 = vpop.permute.xlu1 %273  ;;  %v264_v36 = vpop.permute.xlu0 %263 }
  0x8d   :  { %v284_v37 = vpop.permute.xlu1 %283  ;;  %v279_v38 = vpop.permute.xlu0 %278 }
  0x91   :  { %v294_v39 = vpop.permute.xlu1 %293  ;;  %v289_v40 = vpop.permute.xlu0 %288 }
  0x95   :  { %v304_v41 = vpop.permute.xlu1 %303  ;;  %v299_v42 = vpop.permute.xlu0 %298 }
  0x99   :  { %v314_v43 = vpop.permute.xlu1 %313  ;;  %v309_v44 = vpop.permute.xlu0 %308 }
  0x9d   :  { %v324_v45 = vpop.permute.xlu1 %323  ;;  %v319_v46 = vpop.permute.xlu0 %318 }
  0xa3   :  { %v334_v3 = vpop.permute.xlu1 %333  ;;  %v329_v4 = vpop.permute.xlu0 %328 }
  0xf5   :  { %v565_v47 = vpop.f32.mrb[0].mxu0  ;;  %v573_v48 = vpop.f32.mrb[0].mxu1 }
  0xf6   :  { %v177_v49 = vpop.f32.mrb[1].mxu0  ;;  %v209_v50 = vpop.f32.mrb[1].mxu1  ;;  %v338_v53 = vmul.f32 %v565_v47, %v269_v33  ;;  %v346_v54 = vmul.f32 %v573_v48, %v309_v44 }
  0xf7   :  { %v566_v51 = vpop.f32.mrb[2].mxu0  ;;  %v574_v52 = vpop.f32.mrb[2].mxu1  ;;  %v336_v59 = vmul.f32 %v259_v34, %v177_v49  ;;  %v344_v60 = vmul.f32 %v299_v42, %v209_v50 }
  0xf8   :  { %v339_v55 = vmul.f32 %v566_v51, %v274_v35  ;;  %v347_v56 = vmul.f32 %v574_v52, %v314_v43  ;;  %v180_v57 = vpop.f32.mrb[3].mxu0  ;;  %v212_v58 = vpop.f32.mrb[3].mxu1 }
  0xf9   :  { %v337_v61 = vmul.f32 %v264_v36, %v180_v57  ;;  %v345_v62 = vmul.f32 %v304_v41, %v212_v58 }
  0xfa   :  { %v492_v63 = vpack.c.bf16 %v339_v55, %v338_v53  ;;  %v512_v0 = vpack.c.bf16 %v347_v56, %v346_v54 }
  0xfb   :  { %v487_v1 = vpack.c.bf16 %v337_v61, %v336_v59  ;;  %v507_v2 = vpack.c.bf16 %v345_v62, %v344_v60 }
  0xfc   :  { %524 = vst [vmem:[%s758_s3 + $0x8] sm:$0xff] %v492_v63   ;;  %528 = vst [vmem:[%s758_s3 + $0x28] sm:$0xff] %v512_v0  }
  0xfd   :  { %488 = vst [vmem:[%s758_s3] sm:$0xff] %v487_v1   ;;  %527 = vst [vmem:[%s758_s3 + $0x20] sm:$0xff] %v507_v2   ;;  %v569_v5 = vpop.f32.mrb[4].mxu0  ;;  %v577_v6 = vpop.f32.mrb[4].mxu1 }
  0xfe   :  { %v193_v7 = vpop.f32.mrb[5].mxu0  ;;  %v225_v8 = vpop.f32.mrb[5].mxu1  ;;  %v342_v11 = vmul.f32 %v569_v5, %v289_v40  ;;  %v350_v12 = vmul.f32 %v577_v6, %v329_v4 }
  0xff   :  { %v570_v9 = vpop.f32.mrb[6].mxu0  ;;  %v578_v10 = vpop.f32.mrb[6].mxu1  ;;  %v340_v17 = vmul.f32 %v279_v38, %v193_v7  ;;  %v348_v18 = vmul.f32 %v319_v46, %v225_v8 }
 0x100   :  { %v343_v13 = vmul.f32 %v570_v9, %v294_v39  ;;  %v351_v14 = vmul.f32 %v578_v10, %v334_v3  ;;  %v196_v15 = vpop.f32.mrb[7].mxu0  ;;  %v228_v16 = vpop.f32.mrb[7].mxu1 }
 0x101   :  { %v341_v19 = vmul.f32 %v284_v37, %v196_v15  ;;  %v349_v20 = vmul.f32 %v324_v45, %v228_v16 }
 0x102   :  { %v502_v21 = vpack.c.bf16 %v343_v13, %v342_v11  ;;  %v522_v22 = vpack.c.bf16 %v351_v14, %v350_v12 }
 0x103   :  { %v497_v23 = vpack.c.bf16 %v341_v19, %v340_v17  ;;  %v517_v24 = vpack.c.bf16 %v349_v20, %v348_v18 }
 0x104   :  { %526 = vst [vmem:[%s758_s3 + $0x18] sm:$0xff] %v502_v21   ;;  %530 = vst [vmem:[%s758_s3 + $0x38] sm:$0xff] %v522_v22  }
 0x105   :  { %525 = vst [vmem:[%s758_s3 + $0x10] sm:$0xff] %v497_v23   ;;  %529 = vst [vmem:[%s758_s3 + $0x30] sm:$0xff] %v517_v24  }

// kernel: gcn_default_forward.4
= control target key start
LH: loop header
LB: loop body
LE: loop exit
PB: predicated region body
PF: predicated region fallthrough
CT: control target
= control target key end

     0   :  { %v995_v1 = vmov 0   ;;  %s1275_s1 = inlined_call_operand.vmem [shape: bf16[128,128], index: 1, kind: input, shape index: {}]   ;;  %s1276_s0 = inlined_call_operand.vmem [shape: s8[128,128], index: 0, kind: input, shape index: {}]   ;;  %s1277_s4 = inlined_call_operand.vmem [shape: f32[128,1], index: 4, kind: input, shape index: {}]   ;;  %s1278_s3 = inlined_call_operand.vmem [shape: bf16[128,128], index: 3, kind: input, shape index: {}]   ;;  %s1279_s2 = inlined_call_operand.vmem [shape: f32[1,128], index: 2, kind: input, shape index: {}]   ;;  %s1280_s5 = inlined_call_operand.vmem [shape: bf16[128,128], index: 5, kind: output, shape index: {}]  }
   0x1   :  { %v979_v0 = vld [vmem:[%s1275_s1] sm:$0xff]   ;;  %977 = vset.pattern.permute.xlu0 %v995_v1  ;;  %978 = vset.pattern.permute.xlu1 %v995_v1  ;;  %v980_v2 = vld [vmem:[%s1275_s1 + $0x8] sm:$0xff]   ;;  %v981_v3 = vld [vmem:[%s1275_s1 + $0x10] sm:$0xff]  }
   0x2   :  { %912 = vmatprep.subr.bf16.mxu0 %v979_v0  ;;  %v982_v4 = vld [vmem:[%s1275_s1 + $0x18] sm:$0xff]   ;;  %v42_v5 = vld [vmem:[%s1276_s0] sm:$0x3]  ;;  %v43_v6 = vld [vmem:[%s1276_s0 + $0x2] sm:$0x3] }
   0x3   :  { %913 = vmatpush3.bf16.msra.mxu0 %v979_v0  ;;  %v58_v7 = vunpack.c.l.s8.bf16 %v42_v5  ;;  %v59_v8 = vunpack.c.l.s8.bf16 %v43_v6  ;;  %v983_v10 = vld [vmem:[%s1275_s1 + $0x20] sm:$0xff]   ;;  %v340_v12 = vld [vmem:[%s1277_s4 + $0x10] sm:$0xff]  ;;  %v339_v13 = vld [vmem:[%s1277_s4 + $0x8] sm:$0xff] }
   0x4   :  { %914 = vmatprep.subr.bf16.mxu0 %v980_v2  ;;  %v338_v11 = vld [vmem:[%s1277_s4] sm:$0xff]  ;;  %382 = vperm.xlu1 %978, %v340_v12   ;;  %v341_v14 = vld [vmem:[%s1277_s4 + $0x18] sm:$0xff]  ;;  %v984_v15 = vld [vmem:[%s1275_s1 + $0x28] sm:$0xff]  }
   0x5   :  { %v776_v9 = vcombine.low %v58_v7, %v59_v8  ;;  %372 = vperm.xlu0 %977, %v338_v11   ;;  %v342_v16 = vld [vmem:[%s1277_s4 + $0x20] sm:$0xff]  ;;  %v343_v17 = vld [vmem:[%s1277_s4 + $0x28] sm:$0xff]  ;;  %v985_v18 = vld [vmem:[%s1275_s1 + $0x30] sm:$0xff]  }
   0x6   :  { %v44_v19 = vld [vmem:[%s1276_s0 + $0x4] sm:$0x3]  ;;  %v45_v20 = vld [vmem:[%s1276_s0 + $0x6] sm:$0x3]  ;;  %v344_v21 = vld [vmem:[%s1277_s4 + $0x30] sm:$0xff] }
   0x7   :  { %915 = vmatpush3.bf16.msra.mxu0 %v980_v2  ;;  %928 = vmatprep.mubr.bf16.mxu0 %v776_v9  ;;  %v345_v22 = vld [vmem:[%s1277_s4 + $0x38] sm:$0xff]  ;;  %v46_v24 = vld [vmem:[%s1276_s0 + $0x8] sm:$0x3]  ;;  %v47_v25 = vld [vmem:[%s1276_s0 + $0xa] sm:$0x3]  ;;  %v60_v30 = vunpack.c.l.s8.bf16 %v44_v19  ;;  %v61_v31 = vunpack.c.l.s8.bf16 %v45_v20 }
   0x8   :  { %916 = vmatprep.subr.bf16.mxu0 %v981_v3  ;;  %387 = vperm.xlu1 %978, %v341_v14   ;;  %v986_v23 = vld [vmem:[%s1275_s1 + $0x38] sm:$0xff]   ;;  %v987_v26 = vld [vmem:[%s1278_s3] sm:$0xff]   ;;  %v347_v28 = vld [vmem:[%s1277_s4 + $0x48] sm:$0xff]  ;;  %v62_v32 = vunpack.c.l.s8.bf16 %v46_v24  ;;  %v63_v33 = vunpack.c.l.s8.bf16 %v47_v25 }
   0x9   :  { %377 = vperm.xlu0 %977, %v339_v13   ;;  %944 = vmatprep.subr.bf16.mxu1 %v987_v26  ;;  %v346_v27 = vld [vmem:[%s1277_s4 + $0x40] sm:$0xff]  ;;  %v988_v29 = vld [vmem:[%s1278_s3 + $0x8] sm:$0xff]   ;;  %v989_v34 = vld [vmem:[%s1278_s3 + $0x10] sm:$0xff]   ;;  %v777_v35 = vcombine.low %v60_v30, %v61_v31 }
   0xa   :  { %945 = vmatpush3.bf16.msra.mxu1 %v987_v26  ;;  %v778_v36 = vcombine.low %v62_v32, %v63_v33  ;;  %v48_v37 = vld [vmem:[%s1276_s0 + $0xc] sm:$0x3]  ;;  %v49_v38 = vld [vmem:[%s1276_s0 + $0xe] sm:$0x3]  ;;  %v348_v39 = vld [vmem:[%s1277_s4 + $0x50] sm:$0xff] }
   0xb   :  { %917 = vmatpush3.bf16.msra.mxu0 %v981_v3  ;;  %946 = vmatprep.subr.bf16.mxu1 %v988_v29  ;;  %v50_v40 = vld [vmem:[%s1276_s0 + $0x10] sm:$0x3]  ;;  %v51_v41 = vld [vmem:[%s1276_s0 + $0x12] sm:$0x3]  ;;  %v349_v42 = vld [vmem:[%s1277_s4 + $0x58] sm:$0xff]  ;;  %v64_v43 = vunpack.c.l.s8.bf16 %v48_v37  ;;  %v65_v44 = vunpack.c.l.s8.bf16 %v49_v38 }
   0xc   :  { %918 = vmatprep.subr.bf16.mxu0 %v982_v4  ;;  %397 = vperm.xlu1 %978, %v343_v17   ;;  %v990_v45 = vld [vmem:[%s1278_s3 + $0x18] sm:$0xff]   ;;  %v66_v46 = vunpack.c.l.s8.bf16 %v50_v40  ;;  %v67_v47 = vunpack.c.l.s8.bf16 %v51_v41  ;;  %v350_v48 = vld [vmem:[%s1277_s4 + $0x60] sm:$0xff]  ;;  %v351_v49 = vld [vmem:[%s1277_s4 + $0x68] sm:$0xff] }
   0xd   :  { %392 = vperm.xlu0 %977, %v342_v16   ;;  %v779_v50 = vcombine.low %v64_v43, %v65_v44  ;;  %v991_v51 = vld [vmem:[%s1278_s3 + $0x20] sm:$0xff]   ;;  %v52_v53 = vld [vmem:[%s1276_s0 + $0x14] sm:$0x3]  ;;  %v53_v54 = vld [vmem:[%s1276_s0 + $0x16] sm:$0x3] }
   0xe   :  { %947 = vmatpush3.bf16.msra.mxu1 %v988_v29  ;;  %v780_v52 = vcombine.low %v66_v46, %v67_v47  ;;  %v352_v55 = vld [vmem:[%s1277_s4 + $0x70] sm:$0xff]  ;;  %v54_v56 = vld [vmem:[%s1276_s0 + $0x18] sm:$0x3]  ;;  %v55_v57 = vld [vmem:[%s1276_s0 + $0x1a] sm:$0x3]  ;;  %v68_v59 = vunpack.c.l.s8.bf16 %v52_v53  ;;  %v69_v60 = vunpack.c.l.s8.bf16 %v53_v54 }
   0xf   :  { %919 = vmatpush3.bf16.msra.mxu0 %v982_v4  ;;  %948 = vmatprep.subr.bf16.mxu1 %v989_v34  ;;  %v353_v58 = vld [vmem:[%s1277_s4 + $0x78] sm:$0xff]  ;;  %v70_v61 = vunpack.c.l.s8.bf16 %v54_v56  ;;  %v71_v62 = vunpack.c.l.s8.bf16 %v55_v57  ;;  %v992_v6 = vld [vmem:[%s1278_s3 + $0x28] sm:$0xff]   ;;  %v993_v7 = vld [vmem:[%s1278_s3 + $0x30] sm:$0xff]  }
  0x10   :  { %920 = vmatprep.subr.bf16.mxu0 %v983_v10  ;;  %407 = vperm.xlu1 %978, %v345_v22   ;;  %v781_v63 = vcombine.low %v68_v59, %v69_v60  ;;  %v56_v1 = vld [vmem:[%s1276_s0 + $0x1c] sm:$0x3]  ;;  %v57_v2 = vld [vmem:[%s1276_s0 + $0x1e] sm:$0x3]  ;;  %v1187_v17 = vld [vmem:[%s1279_s2] ss:$0 sm:$0xff] }
  0x11   :  { %402 = vperm.xlu0 %977, %v344_v21   ;;  %v782_v0 = vcombine.low %v70_v61, %v71_v62  ;;  %v72_v3 = vunpack.c.l.s8.bf16 %v56_v1  ;;  %v73_v4 = vunpack.c.l.s8.bf16 %v57_v2  ;;  %v994_v8 = vld [vmem:[%s1278_s3 + $0x38] sm:$0xff]  }
  0x12   :  { %949 = vmatpush3.bf16.msra.mxu1 %v989_v34 }
  0x13   :  { %921 = vmatpush3.bf16.msra.mxu0 %v983_v10  ;;  %950 = vmatprep.subr.bf16.mxu1 %v990_v45  ;;  %v783_v5 = vcombine.low %v72_v3, %v73_v4 }
  0x14   :  { %922 = vmatprep.subr.bf16.mxu0 %v984_v15  ;;  %417 = vperm.xlu1 %978, %v347_v28  }
  0x15   :  { %412 = vperm.xlu0 %977, %v346_v27  }
  0x16   :  { %951 = vmatpush3.bf16.msra.mxu1 %v990_v45 }
  0x17   :  { %923 = vmatpush3.bf16.msra.mxu0 %v984_v15  ;;  %952 = vmatprep.subr.bf16.mxu1 %v991_v51 }
  0x18   :  { %924 = vmatprep.subr.bf16.mxu0 %v985_v18  ;;  %427 = vperm.xlu1 %978, %v349_v42  }
  0x19   :  { %422 = vperm.xlu0 %977, %v348_v39  }
  0x1a   :  { %953 = vmatpush3.bf16.msra.mxu1 %v991_v51 }
  0x1b   :  { %925 = vmatpush3.bf16.msra.mxu0 %v985_v18  ;;  %954 = vmatprep.subr.bf16.mxu1 %v992_v6 }
  0x1c   :  { %926 = vmatprep.subr.bf16.mxu0 %v986_v23  ;;  %437 = vperm.xlu1 %978, %v351_v49  }
  0x1d   :  { %432 = vperm.xlu0 %977, %v350_v48  }
  0x1e   :  { %955 = vmatpush3.bf16.msra.mxu1 %v992_v6 }
  0x1f   :  { %927 = vmatpush3.bf16.msra.mxu0 %v986_v23  ;;  %956 = vmatprep.subr.bf16.mxu1 %v993_v7 }
  0x20   :  { %447 = vperm.xlu1 %978, %v353_v58  }
  0x21   :  { %442 = vperm.xlu0 %977, %v352_v55  }
  0x22   :  { %929 = vmatmul.mubr.bf16.vlgmr.msra.gmra.mrb[0].mxu0 %v777_v35  ;;  %957 = vmatpush3.bf16.msra.mxu1 %v993_v7 }
  0x23   :  { %932 = vmatprep.mubr.bf16.mxu0 %v778_v36  ;;  %958 = vmatprep.subr.bf16.mxu1 %v994_v8 }
  0x26   :  { %959 = vmatpush3.bf16.msra.mxu1 %v994_v8 }
  0x2a   :  { %933 = vmatmul.mubr.bf16.gmra.mrb[4].mxu0 %v779_v50 }
  0x2b   :  { %936 = vmatprep.mubr.bf16.mxu0 %v780_v52 }
  0x32   :  { %937 = vmatmul.mubr.bf16.gmra.mrb[8].mxu0 %v781_v63 }
  0x33   :  { %940 = vmatprep.mubr.bf16.mxu0 %v782_v0 }
  0x3a   :  { %941 = vmatmul.mubr.bf16.gmra.mrb[12].mxu0 %v783_v5 }
  0x83   :  { %v1172_v10 = vpop.permute.xlu1 %382 }
  0x84   :  { %v1170_v9 = vpop.permute.xlu0 %372 }
  0x87   :  { %v1176_v12 = vpop.permute.xlu1 %387 }
  0x88   :  { %v1174_v11 = vpop.permute.xlu0 %377 }
  0x8b   :  { %v1180_v14 = vpop.permute.xlu1 %397 }
  0x8c   :  { %v1178_v13 = vpop.permute.xlu0 %392 }
  0x8f   :  { %v1190_v20 = vpop.permute.xlu1 %407 }
  0x90   :  { %v1182_v15 = vpop.permute.xlu0 %402 }
  0x93   :  { %v1201_v33 = vpop.permute.xlu1 %417 }
  0x94   :  { %v1198_v29 = vpop.permute.xlu0 %412 }
  0x97   :  { %v1212_v50 = vpop.permute.xlu1 %427 }
  0x98   :  { %v1207_v46 = vpop.permute.xlu0 %422 }
  0x9b   :  { %v1221_v3 = vpop.permute.xlu1 %437 }
  0x9c   :  { %v1216_v60 = vpop.permute.xlu0 %432 }
  0xf5   :  { %v930_v16 = vpop.f32.mrb[0].mxu0 }
  0xf6   :  { %v452_v18 = vmul.f32 %v930_v16, %v1172_v10  ;;  %v240_v19 = vpop.f32.mrb[1].mxu0 }
  0xf7   :  { %v450_v21 = vmul.f32 %v1170_v9, %v240_v19  ;;  %v931_v22 = vpop.f32.mrb[2].mxu0 }
  0xf8   :  { %v475_v23 = vadd.f32 %v1187_v17, %v452_v18  ;;  %v453_v24 = vmul.f32 %v931_v22, %v1176_v12  ;;  %v243_v25 = vpop.f32.mrb[3].mxu0  ;;  %v1227_v18 = vpop.permute.xlu0 %442 }
  0xf9   :  { %v451_v26 = vmul.f32 %v1174_v11, %v243_v25  ;;  %v473_v27 = vadd.f32 %v1187_v17, %v450_v21 }
  0xfa   :  { %v476_v28 = vadd.f32 %v1187_v17, %v453_v24  ;;  %v491_v31 = vmax.f32 %v475_v23, 0.0 }
  0xfb   :  { %v474_v30 = vadd.f32 %v1187_v17, %v451_v26  ;;  %v489_v35 = vmax.f32 %v473_v27, 0.0  ;;  %v448_v26 = vpop.permute.xlu1 %447 }
  0xfc   :  { %v492_v32 = vmax.f32 %v476_v28, 0.0 }
  0xfd   :  { %v934_v34 = vpop.f32.mrb[4].mxu0  ;;  %v490_v36 = vmax.f32 %v474_v30, 0.0 }
  0xfe   :  { %v456_v37 = vmul.f32 %v934_v34, %v1182_v15  ;;  %v256_v38 = vpop.f32.mrb[5].mxu0  ;;  %v506_v39 = vpack.c.bf16 %v492_v32, %v491_v31 }
  0xff   :  { %v454_v40 = vmul.f32 %v1178_v13, %v256_v38  ;;  %v935_v41 = vpop.f32.mrb[6].mxu0  ;;  %v505_v42 = vpack.c.bf16 %v490_v36, %v489_v35 }
 0x100   :  { %v479_v43 = vadd.f32 %v1187_v17, %v456_v37  ;;  %v457_v44 = vmul.f32 %v935_v41, %v1190_v20  ;;  %v259_v45 = vpop.f32.mrb[7].mxu0 }
 0x101   :  { %v477_v47 = vadd.f32 %v1187_v17, %v454_v40  ;;  %v455_v48 = vmul.f32 %v1180_v14, %v259_v45  ;;  %960 = vmatprep.mubr.bf16.mxu1 %v505_v42 }
 0x102   :  { %v480_v49 = vadd.f32 %v1187_v17, %v457_v44  ;;  %961 = vmatmul.mubr.bf16.vlgmr.msra.gmra.mrb[0].mxu1 %v506_v39  ;;  %v495_v52 = vmax.f32 %v479_v43, 0.0 }
 0x103   :  { %v478_v51 = vadd.f32 %v1187_v17, %v455_v48  ;;  %v493_v54 = vmax.f32 %v477_v47, 0.0 }
 0x104   :  { %v496_v53 = vmax.f32 %v480_v49, 0.0 }
 0x105   :  { %v494_v55 = vmax.f32 %v478_v51, 0.0  ;;  %v938_v56 = vpop.f32.mrb[8].mxu0 }
 0x106   :  { %v460_v57 = vmul.f32 %v938_v56, %v1207_v46  ;;  %v272_v58 = vpop.f32.mrb[9].mxu0  ;;  %v508_v59 = vpack.c.bf16 %v496_v53, %v495_v52 }
 0x107   :  { %v458_v61 = vmul.f32 %v1198_v29, %v272_v58  ;;  %v939_v62 = vpop.f32.mrb[10].mxu0  ;;  %v507_v63 = vpack.c.bf16 %v494_v55, %v493_v54 }
 0x108   :  { %v483_v0 = vadd.f32 %v1187_v17, %v460_v57  ;;  %v461_v1 = vmul.f32 %v939_v62, %v1212_v50  ;;  %v275_v2 = vpop.f32.mrb[11].mxu0 }
 0x109   :  { %v481_v4 = vadd.f32 %v1187_v17, %v458_v61  ;;  %v459_v5 = vmul.f32 %v1201_v33, %v275_v2  ;;  %964 = vmatprep.mubr.bf16.mxu1 %v507_v63 }
 0x10a   :  { %v484_v6 = vadd.f32 %v1187_v17, %v461_v1  ;;  %965 = vmatmul.mubr.bf16.gmra.mrb[4].mxu1 %v508_v59  ;;  %v499_v8 = vmax.f32 %v483_v0, 0.0 }
 0x10b   :  { %v482_v7 = vadd.f32 %v1187_v17, %v459_v5  ;;  %v497_v19 = vmax.f32 %v481_v4, 0.0 }
 0x10c   :  { %v500_v16 = vmax.f32 %v484_v6, 0.0 }
 0x10d   :  { %v498_v21 = vmax.f32 %v482_v7, 0.0  ;;  %v942_v22 = vpop.f32.mrb[12].mxu0 }
 0x10e   :  { %v464_v23 = vmul.f32 %v942_v22, %v1227_v18  ;;  %v288_v24 = vpop.f32.mrb[13].mxu0  ;;  %v510_v25 = vpack.c.bf16 %v500_v16, %v499_v8 }
 0x10f   :  { %v462_v27 = vmul.f32 %v1216_v60, %v288_v24  ;;  %v943_v28 = vpop.f32.mrb[14].mxu0  ;;  %v509_v30 = vpack.c.bf16 %v498_v21, %v497_v19 }
 0x110   :  { %v487_v31 = vadd.f32 %v1187_v17, %v464_v23  ;;  %v465_v32 = vmul.f32 %v943_v28, %v448_v26  ;;  %v291_v34 = vpop.f32.mrb[15].mxu0 }
 0x111   :  { %v485_v35 = vadd.f32 %v1187_v17, %v462_v27  ;;  %v463_v36 = vmul.f32 %v1221_v3, %v291_v34  ;;  %968 = vmatprep.mubr.bf16.mxu1 %v509_v30 }
 0x112   :  { %v488_v37 = vadd.f32 %v1187_v17, %v465_v32  ;;  %969 = vmatmul.mubr.bf16.gmra.mrb[8].mxu1 %v510_v25  ;;  %v503_v39 = vmax.f32 %v487_v31, 0.0 }
 0x113   :  { %v486_v38 = vadd.f32 %v1187_v17, %v463_v36  ;;  %v501_v41 = vmax.f32 %v485_v35, 0.0 }
 0x114   :  { %v504_v40 = vmax.f32 %v488_v37, 0.0 }
 0x115   :  { %v502_v42 = vmax.f32 %v486_v38, 0.0 }
 0x116   :  { %v512_v43 = vpack.c.bf16 %v504_v40, %v503_v39 }
 0x117   :  { %v511_v44 = vpack.c.bf16 %v502_v42, %v501_v41 }
 0x119   :  { %972 = vmatprep.mubr.bf16.mxu1 %v511_v44 }
 0x11a   :  { %973 = vmatmul.mubr.bf16.gmra.mrb[12].mxu1 %v512_v43 }
 0x1d5   :  { %v962_v45 = vpop.f32.mrb[0].mxu1 }
 0x1d6   :  { %v611_v47 = vpop.f32.mrb[1].mxu1  ;;  %v676_v49 = vmul.f32 %v962_v45, %v1172_v10 }
 0x1d7   :  { %v963_v48 = vpop.f32.mrb[2].mxu1  ;;  %v674_v53 = vmul.f32 %v611_v47, %v1170_v9 }
 0x1d8   :  { %v677_v51 = vmul.f32 %v963_v48, %v1176_v12  ;;  %v614_v52 = vpop.f32.mrb[3].mxu1 }
 0x1d9   :  { %v675_v17 = vmul.f32 %v614_v52, %v1174_v11 }
 0x1da   :  { %v841_v54 = vpack.c.bf16 %v677_v51, %v676_v49 }
 0x1db   :  { %v836_v55 = vpack.c.bf16 %v675_v17, %v674_v53 }
 0x1dc   :  { %873 = vst [vmem:[%s1280_s5 + $0x8] sm:$0xff] %v841_v54  }
 0x1dd   :  { %837 = vst [vmem:[%s1280_s5] sm:$0xff] %v836_v55   ;;  %v966_v56 = vpop.f32.mrb[4].mxu1 }
 0x1de   :  { %v627_v57 = vpop.f32.mrb[5].mxu1  ;;  %v680_v12 = vmul.f32 %v966_v56, %v1182_v15 }
 0x1df   :  { %v967_v10 = vpop.f32.mrb[6].mxu1  ;;  %v678_v11 = vmul.f32 %v627_v57, %v1178_v13 }
 0x1e0   :  { %v681_v58 = vmul.f32 %v967_v10, %v1190_v20  ;;  %v630_v9 = vpop.f32.mrb[7].mxu1 }
 0x1e1   :  { %v679_v59 = vmul.f32 %v630_v9, %v1180_v14 }
 0x1e2   :  { %v851_v61 = vpack.c.bf16 %v681_v58, %v680_v12 }
 0x1e3   :  { %v846_v62 = vpack.c.bf16 %v679_v59, %v678_v11 }
 0x1e4   :  { %875 = vst [vmem:[%s1280_s5 + $0x18] sm:$0xff] %v851_v61  }
 0x1e5   :  { %874 = vst [vmem:[%s1280_s5 + $0x10] sm:$0xff] %v846_v62   ;;  %v970_v63 = vpop.f32.mrb[8].mxu1 }
 0x1e6   :  { %v643_v0 = vpop.f32.mrb[9].mxu1  ;;  %v684_v20 = vmul.f32 %v970_v63, %v1207_v46 }
 0x1e7   :  { %v971_v15 = vpop.f32.mrb[10].mxu1  ;;  %v682_v14 = vmul.f32 %v643_v0, %v1198_v29 }
 0x1e8   :  { %v685_v1 = vmul.f32 %v971_v15, %v1212_v50  ;;  %v646_v13 = vpop.f32.mrb[11].mxu1 }
 0x1e9   :  { %v683_v2 = vmul.f32 %v646_v13, %v1201_v33 }
 0x1ea   :  { %v861_v4 = vpack.c.bf16 %v685_v1, %v684_v20 }
 0x1eb   :  { %v856_v5 = vpack.c.bf16 %v683_v2, %v682_v14 }
 0x1ec   :  { %877 = vst [vmem:[%s1280_s5 + $0x28] sm:$0xff] %v861_v4  }
 0x1ed   :  { %876 = vst [vmem:[%s1280_s5 + $0x20] sm:$0xff] %v856_v5   ;;  %v974_v6 = vpop.f32.mrb[12].mxu1 }
 0x1ee   :  { %v659_v7 = vpop.f32.mrb[13].mxu1  ;;  %v688_v50 = vmul.f32 %v974_v6, %v1227_v18 }
 0x1ef   :  { %v975_v46 = vpop.f32.mrb[14].mxu1  ;;  %v686_v29 = vmul.f32 %v659_v7, %v1216_v60 }
 0x1f0   :  { %v689_v8 = vmul.f32 %v975_v46, %v448_v26  ;;  %v662_v16 = vpop.f32.mrb[15].mxu1 }
 0x1f1   :  { %v687_v33 = vmul.f32 %v662_v16, %v1221_v3 }
 0x1f2   :  { %v871_v19 = vpack.c.bf16 %v689_v8, %v688_v50 }
 0x1f3   :  { %v866_v21 = vpack.c.bf16 %v687_v33, %v686_v29 }
 0x1f4   :  { %879 = vst [vmem:[%s1280_s5 + $0x38] sm:$0xff] %v871_v19  }
 0x1f5   :  { %878 = vst [vmem:[%s1280_s5 + $0x30] sm:$0xff] %v866_v21  }

// kernel: gcn_default_forward.5
= control target key start
LH: loop header
LB: loop body
LE: loop exit
PB: predicated region body
PF: predicated region fallthrough
CT: control target
= control target key end

     0   :  { %v600_v1 = vmov 0   ;;  %s800_s1 = inlined_call_operand.vmem [shape: bf16[128,128], index: 1, kind: input, shape index: {}]   ;;  %s801_s0 = inlined_call_operand.vmem [shape: s8[128,128], index: 0, kind: input, shape index: {}]   ;;  %s802_s3 = inlined_call_operand.vmem [shape: f32[128,1], index: 3, kind: input, shape index: {}]   ;;  %s803_s2 = inlined_call_operand.vmem [shape: f32[1,128], index: 2, kind: input, shape index: {}]   ;;  %s804_s4 = inlined_call_operand.vmem [shape: f32[128,128], index: 4, kind: output, shape index: {}]  }
   0x1   :  { %v592_v0 = vld [vmem:[%s800_s1] sm:$0xff]   ;;  %591 = vset.pattern.permute.xlu1 %v600_v1  ;;  %590 = vset.pattern.permute.xlu0 %v600_v1  ;;  %v593_v2 = vld [vmem:[%s800_s1 + $0x8] sm:$0xff]   ;;  %v594_v3 = vld [vmem:[%s800_s1 + $0x10] sm:$0xff]  }
   0x2   :  { %541 = vmatprep.subr.bf16.mxu0 %v592_v0  ;;  %573 = vmatprep.subr.bf16.mxu1 %v592_v0  ;;  %v595_v4 = vld [vmem:[%s800_s1 + $0x18] sm:$0xff]   ;;  %v39_v5 = vld [vmem:[%s801_s0] sm:$0x3]  ;;  %v40_v6 = vld [vmem:[%s801_s0 + $0x2] sm:$0x3] }
   0x3   :  { %542 = vmatpush3.bf16.msra.mxu0 %v592_v0  ;;  %581 = vmatpush3.bf16.msra.mxu1 %v592_v0  ;;  %v47_v7 = vld [vmem:[%s801_s0 + $0x10] sm:$0x3]  ;;  %v55_v8 = vunpack.c.l.s8.bf16 %v39_v5  ;;  %v56_v9 = vunpack.c.l.s8.bf16 %v40_v6  ;;  %v48_v10 = vld [vmem:[%s801_s0 + $0x12] sm:$0x3]  ;;  %v596_v14 = vld [vmem:[%s800_s1 + $0x20] sm:$0xff]  }
   0x4   :  { %543 = vmatprep.subr.bf16.mxu0 %v593_v2  ;;  %574 = vmatprep.subr.bf16.mxu1 %v593_v2  ;;  %v63_v11 = vunpack.c.l.s8.bf16 %v47_v7  ;;  %v64_v12 = vunpack.c.l.s8.bf16 %v48_v10  ;;  %v353_v16 = vld [vmem:[%s802_s3 + $0x10] sm:$0xff]  ;;  %v351_v17 = vld [vmem:[%s802_s3] sm:$0xff]  ;;  %v354_v18 = vld [vmem:[%s802_s3 + $0x18] sm:$0xff] }
   0x5   :  { %v508_v13 = vcombine.low %v55_v8, %v56_v9  ;;  %379 = vperm.xlu1 %591, %v353_v16   ;;  %v597_v19 = vld [vmem:[%s800_s1 + $0x28] sm:$0xff]   ;;  %369 = vperm.xlu0 %590, %v351_v17   ;;  %v598_v22 = vld [vmem:[%s800_s1 + $0x30] sm:$0xff]   ;;  %v41_v23 = vld [vmem:[%s801_s0 + $0x4] sm:$0x3] }
   0x6   :  { %v512_v15 = vcombine.low %v63_v11, %v64_v12  ;;  %v352_v20 = vld [vmem:[%s802_s3 + $0x8] sm:$0xff]  ;;  %v599_v24 = vld [vmem:[%s800_s1 + $0x38] sm:$0xff]   ;;  %v42_v25 = vld [vmem:[%s801_s0 + $0x6] sm:$0x3]  ;;  %v57_v34 = vunpack.c.l.s8.bf16 %v41_v23 }
   0x7   :  { %544 = vmatpush3.bf16.msra.mxu0 %v593_v2  ;;  %582 = vmatpush3.bf16.msra.mxu1 %v593_v2  ;;  %v356_v21 = vld [vmem:[%s802_s3 + $0x28] sm:$0xff]  ;;  %v49_v26 = vld [vmem:[%s801_s0 + $0x14] sm:$0x3]  ;;  %v355_v27 = vld [vmem:[%s802_s3 + $0x20] sm:$0xff]  ;;  %v58_v35 = vunpack.c.l.s8.bf16 %v42_v25 }
   0x8   :  { %545 = vmatprep.subr.bf16.mxu0 %v594_v3  ;;  %575 = vmatprep.subr.bf16.mxu1 %v594_v3  ;;  %v50_v28 = vld [vmem:[%s801_s0 + $0x16] sm:$0x3]  ;;  %v43_v29 = vld [vmem:[%s801_s0 + $0x8] sm:$0x3]  ;;  %v358_v30 = vld [vmem:[%s802_s3 + $0x38] sm:$0xff]  ;;  %v65_v36 = vunpack.c.l.s8.bf16 %v49_v26 }
   0x9   :  { %557 = vmatprep.mubr.bf16.mxu0 %v508_v13  ;;  %565 = vmatprep.mubr.bf16.mxu1 %v512_v15  ;;  %v44_v31 = vld [vmem:[%s801_s0 + $0xa] sm:$0x3]  ;;  %v51_v32 = vld [vmem:[%s801_s0 + $0x18] sm:$0x3]  ;;  %v52_v33 = vld [vmem:[%s801_s0 + $0x1a] sm:$0x3]  ;;  %v66_v37 = vunpack.c.l.s8.bf16 %v50_v28  ;;  %v59_v39 = vunpack.c.l.s8.bf16 %v43_v29  ;;  %v509_v44 = vcombine.low %v57_v34, %v58_v35 }
   0xa   :  { %384 = vperm.xlu1 %591, %v354_v18   ;;  %374 = vperm.xlu0 %590, %v352_v20   ;;  %v357_v38 = vld [vmem:[%s802_s3 + $0x30] sm:$0xff]  ;;  %v60_v40 = vunpack.c.l.s8.bf16 %v44_v31  ;;  %v67_v41 = vunpack.c.l.s8.bf16 %v51_v32  ;;  %v68_v42 = vunpack.c.l.s8.bf16 %v52_v33  ;;  %v360_v43 = vld [vmem:[%s802_s3 + $0x48] sm:$0xff]  ;;  %v359_v47 = vld [vmem:[%s802_s3 + $0x40] sm:$0xff] }
   0xb   :  { %546 = vmatpush3.bf16.msra.mxu0 %v594_v3  ;;  %583 = vmatpush3.bf16.msra.mxu1 %v594_v3  ;;  %v513_v45 = vcombine.low %v65_v36, %v66_v37  ;;  %v45_v46 = vld [vmem:[%s801_s0 + $0xc] sm:$0x3]  ;;  %v46_v50 = vld [vmem:[%s801_s0 + $0xe] sm:$0x3]  ;;  %v53_v51 = vld [vmem:[%s801_s0 + $0x1c] sm:$0x3] }
   0xc   :  { %547 = vmatprep.subr.bf16.mxu0 %v595_v4  ;;  %576 = vmatprep.subr.bf16.mxu1 %v595_v4  ;;  %v510_v48 = vcombine.low %v59_v39, %v60_v40  ;;  %v514_v49 = vcombine.low %v67_v41, %v68_v42  ;;  %v54_v52 = vld [vmem:[%s801_s0 + $0x1e] sm:$0x3]  ;;  %v61_v54 = vunpack.c.l.s8.bf16 %v45_v46  ;;  %v62_v55 = vunpack.c.l.s8.bf16 %v46_v50  ;;  %v361_v58 = vld [vmem:[%s802_s3 + $0x50] sm:$0xff]  ;;  %v364_v59 = vld [vmem:[%s802_s3 + $0x68] sm:$0xff] }
   0xd   :  { %v362_v53 = vld [vmem:[%s802_s3 + $0x58] sm:$0xff]  ;;  %v69_v56 = vunpack.c.l.s8.bf16 %v53_v51  ;;  %v70_v57 = vunpack.c.l.s8.bf16 %v54_v52  ;;  %v363_v62 = vld [vmem:[%s802_s3 + $0x60] sm:$0xff]  ;;  %v365_v0 = vld [vmem:[%s802_s3 + $0x70] sm:$0xff] }
   0xe   :  { %394 = vperm.xlu1 %591, %v356_v21   ;;  %389 = vperm.xlu0 %590, %v355_v27   ;;  %v511_v60 = vcombine.low %v61_v54, %v62_v55  ;;  %v366_v63 = vld [vmem:[%s802_s3 + $0x78] sm:$0xff]  ;;  %v524_v16 = vld [vmem:[%s803_s2] ss:$0 sm:$0xff] }
   0xf   :  { %548 = vmatpush3.bf16.msra.mxu0 %v595_v4  ;;  %584 = vmatpush3.bf16.msra.mxu1 %v595_v4  ;;  %v515_v61 = vcombine.low %v69_v56, %v70_v57 }
  0x10   :  { %549 = vmatprep.subr.bf16.mxu0 %v596_v14  ;;  %577 = vmatprep.subr.bf16.mxu1 %v596_v14 }
  0x12   :  { %404 = vperm.xlu1 %591, %v358_v30   ;;  %399 = vperm.xlu0 %590, %v357_v38  }
  0x13   :  { %550 = vmatpush3.bf16.msra.mxu0 %v596_v14  ;;  %585 = vmatpush3.bf16.msra.mxu1 %v596_v14 }
  0x14   :  { %551 = vmatprep.subr.bf16.mxu0 %v597_v19  ;;  %578 = vmatprep.subr.bf16.mxu1 %v597_v19 }
  0x16   :  { %414 = vperm.xlu1 %591, %v360_v43   ;;  %409 = vperm.xlu0 %590, %v359_v47  }
  0x17   :  { %552 = vmatpush3.bf16.msra.mxu0 %v597_v19  ;;  %586 = vmatpush3.bf16.msra.mxu1 %v597_v19 }
  0x18   :  { %553 = vmatprep.subr.bf16.mxu0 %v598_v22  ;;  %579 = vmatprep.subr.bf16.mxu1 %v598_v22 }
  0x1a   :  { %424 = vperm.xlu1 %591, %v362_v53   ;;  %419 = vperm.xlu0 %590, %v361_v58  }
  0x1b   :  { %554 = vmatpush3.bf16.msra.mxu0 %v598_v22  ;;  %587 = vmatpush3.bf16.msra.mxu1 %v598_v22 }
  0x1c   :  { %555 = vmatprep.subr.bf16.mxu0 %v599_v24  ;;  %580 = vmatprep.subr.bf16.mxu1 %v599_v24 }
  0x1e   :  { %434 = vperm.xlu1 %591, %v364_v59   ;;  %429 = vperm.xlu0 %590, %v363_v62  }
  0x1f   :  { %556 = vmatpush3.bf16.msra.mxu0 %v599_v24  ;;  %588 = vmatpush3.bf16.msra.mxu1 %v599_v24 }
  0x22   :  { %558 = vmatmul.mubr.bf16.vlgmr.msra.gmra.mrb[0].mxu0 %v509_v44  ;;  %566 = vmatmul.mubr.bf16.vlgmr.msra.gmra.mrb[0].mxu1 %v513_v45 }
  0x23   :  { %561 = vmatprep.mubr.bf16.mxu0 %v510_v48  ;;  %569 = vmatprep.mubr.bf16.mxu1 %v514_v49 }
  0x24   :  { %444 = vperm.xlu1 %591, %v366_v63   ;;  %439 = vperm.xlu0 %590, %v365_v0  }
  0x2a   :  { %562 = vmatmul.mubr.bf16.gmra.mrb[4].mxu0 %v511_v60  ;;  %570 = vmatmul.mubr.bf16.gmra.mrb[4].mxu1 %v515_v61 }
  0x84   :  { %v380_v1 = vpop.permute.xlu1 %379  ;;  %v370_v2 = vpop.permute.xlu0 %369 }
  0x89   :  { %v385_v3 = vpop.permute.xlu1 %384  ;;  %v375_v4 = vpop.permute.xlu0 %374 }
  0x8d   :  { %v746_v5 = vpop.permute.xlu1 %394  ;;  %v390_v6 = vpop.permute.xlu0 %389 }
  0x91   :  { %v405_v7 = vpop.permute.xlu1 %404  ;;  %v400_v8 = vpop.permute.xlu0 %399 }
  0x95   :  { %v415_v9 = vpop.permute.xlu1 %414  ;;  %v410_v10 = vpop.permute.xlu0 %409 }
  0x99   :  { %v425_v11 = vpop.permute.xlu1 %424  ;;  %v420_v12 = vpop.permute.xlu0 %419 }
  0x9d   :  { %v435_v13 = vpop.permute.xlu1 %434  ;;  %v430_v14 = vpop.permute.xlu0 %429 }
  0xa3   :  { %v445_v40 = vpop.permute.xlu1 %444  ;;  %v440_v41 = vpop.permute.xlu0 %439 }
  0xf5   :  { %v559_v15 = vpop.f32.mrb[0].mxu0  ;;  %v567_v17 = vpop.f32.mrb[0].mxu1 }
  0xf6   :  { %v449_v18 = vmul.f32 %v559_v15, %v380_v1  ;;  %v457_v19 = vmul.f32 %v567_v17, %v420_v12  ;;  %v237_v20 = vpop.f32.mrb[1].mxu0  ;;  %v269_v21 = vpop.f32.mrb[1].mxu1 }
  0xf7   :  { %v447_v22 = vmul.f32 %v370_v2, %v237_v20  ;;  %v455_v23 = vmul.f32 %v410_v10, %v269_v21  ;;  %v560_v24 = vpop.f32.mrb[2].mxu0  ;;  %v568_v25 = vpop.f32.mrb[2].mxu1 }
  0xf8   :  { %v472_v26 = vadd.f32 %v524_v16, %v449_v18  ;;  %v480_v27 = vadd.f32 %v524_v16, %v457_v19  ;;  %v450_v28 = vmul.f32 %v560_v24, %v385_v3  ;;  %v458_v29 = vmul.f32 %v568_v25, %v425_v11  ;;  %v240_v30 = vpop.f32.mrb[3].mxu0  ;;  %v272_v31 = vpop.f32.mrb[3].mxu1 }
  0xf9   :  { %v470_v32 = vadd.f32 %v524_v16, %v447_v22  ;;  %v478_v33 = vadd.f32 %v524_v16, %v455_v23  ;;  %v448_v34 = vmul.f32 %v375_v4, %v240_v30  ;;  %v456_v35 = vmul.f32 %v415_v9, %v272_v31 }
  0xfa   :  { %488 = vst [vmem:[%s804_s4 + $0x10] sm:$0xff] %v472_v26  ;;  %496 = vst [vmem:[%s804_s4 + $0x50] sm:$0xff] %v480_v27  ;;  %v473_v36 = vadd.f32 %v524_v16, %v450_v28  ;;  %v481_v37 = vadd.f32 %v524_v16, %v458_v29 }
  0xfb   :  { %486 = vst [vmem:[%s804_s4] sm:$0xff] %v470_v32  ;;  %494 = vst [vmem:[%s804_s4 + $0x40] sm:$0xff] %v478_v33  ;;  %v471_v38 = vadd.f32 %v524_v16, %v448_v34  ;;  %v479_v39 = vadd.f32 %v524_v16, %v456_v35 }
  0xfc   :  { %489 = vst [vmem:[%s804_s4 + $0x18] sm:$0xff] %v473_v36  ;;  %497 = vst [vmem:[%s804_s4 + $0x58] sm:$0xff] %v481_v37 }
  0xfd   :  { %487 = vst [vmem:[%s804_s4 + $0x8] sm:$0xff] %v471_v38  ;;  %495 = vst [vmem:[%s804_s4 + $0x48] sm:$0xff] %v479_v39  ;;  %v563_v42 = vpop.f32.mrb[4].mxu0  ;;  %v571_v43 = vpop.f32.mrb[4].mxu1 }
  0xfe   :  { %v453_v44 = vmul.f32 %v563_v42, %v400_v8  ;;  %v461_v45 = vmul.f32 %v571_v43, %v440_v41  ;;  %v253_v46 = vpop.f32.mrb[5].mxu0  ;;  %v285_v47 = vpop.f32.mrb[5].mxu1 }
  0xff   :  { %v451_v48 = vmul.f32 %v390_v6, %v253_v46  ;;  %v459_v49 = vmul.f32 %v430_v14, %v285_v47  ;;  %v564_v50 = vpop.f32.mrb[6].mxu0  ;;  %v572_v51 = vpop.f32.mrb[6].mxu1 }
 0x100   :  { %v476_v52 = vadd.f32 %v524_v16, %v453_v44  ;;  %v484_v53 = vadd.f32 %v524_v16, %v461_v45  ;;  %v454_v54 = vmul.f32 %v564_v50, %v405_v7  ;;  %v462_v55 = vmul.f32 %v572_v51, %v445_v40  ;;  %v256_v56 = vpop.f32.mrb[7].mxu0  ;;  %v288_v57 = vpop.f32.mrb[7].mxu1 }
 0x101   :  { %v474_v58 = vadd.f32 %v524_v16, %v451_v48  ;;  %v482_v59 = vadd.f32 %v524_v16, %v459_v49  ;;  %v452_v60 = vmul.f32 %v746_v5, %v256_v56  ;;  %v460_v61 = vmul.f32 %v435_v13, %v288_v57 }
 0x102   :  { %492 = vst [vmem:[%s804_s4 + $0x30] sm:$0xff] %v476_v52  ;;  %500 = vst [vmem:[%s804_s4 + $0x70] sm:$0xff] %v484_v53  ;;  %v477_v62 = vadd.f32 %v524_v16, %v454_v54  ;;  %v485_v63 = vadd.f32 %v524_v16, %v462_v55 }
 0x103   :  { %490 = vst [vmem:[%s804_s4 + $0x20] sm:$0xff] %v474_v58  ;;  %498 = vst [vmem:[%s804_s4 + $0x60] sm:$0xff] %v482_v59  ;;  %v475_v0 = vadd.f32 %v524_v16, %v452_v60  ;;  %v483_v1 = vadd.f32 %v524_v16, %v460_v61 }
 0x104   :  { %493 = vst [vmem:[%s804_s4 + $0x38] sm:$0xff] %v477_v62  ;;  %501 = vst [vmem:[%s804_s4 + $0x78] sm:$0xff] %v485_v63 }
 0x105   :  { %491 = vst [vmem:[%s804_s4 + $0x28] sm:$0xff] %v475_v0  ;;  %499 = vst [vmem:[%s804_s4 + $0x68] sm:$0xff] %v483_v1 }

</bundles_post_ra>
